<compile_context>
chip_gen: v6e
topology: v6e:2x2x1
jax: 0.10.0
libtpu: 0.0.40
codegen_flags: <defaults>
</compile_context>

<pallas_src>
import functools

import jax
import jax.numpy as jnp
from jax.experimental import pallas as pl
from jax.experimental.pallas import tpu as pltpu


def _round_up(x: int, m: int) -> int:
    return ((x + m - 1) // m) * m


def expert_kernel(x_ref, w1_ref, b1_ref, w2_ref, b2_ref, o_ref):
    # Cast the streamed activation to the (pre-cast) weight dtype in-kernel so
    # HBM only ever sees the original x.  f32 accumulation + f32 bias/ReLU
    # epilogue (also the right choice for v5e's f32-only VPU).
    x = x_ref[...].astype(w1_ref.dtype)
    h = jnp.dot(x, w1_ref[...], preferred_element_type=jnp.float32)
    h = jnp.maximum(h + b1_ref[...], 0.0)
    y = jnp.dot(h.astype(w2_ref.dtype), w2_ref[...],
                preferred_element_type=jnp.float32)
    o_ref[...] = (y + b2_ref[...]).astype(o_ref.dtype)


def prepare_expert_params(w1, b1, w2, b2, *, compute_dtype=jnp.bfloat16):
    """One-time weight formatting -- hoisted out of the per-call hot path."""
    return (
        w1.astype(compute_dtype),
        b1.reshape(1, -1).astype(jnp.float32),
        w2.astype(compute_dtype),
        b2.reshape(1, -1).astype(jnp.float32),
    )


def expert_forward(x, params, *, tile_n=512):
    """y = ReLU(x @ w1 + b1) @ w2 + b2.  `params` from prepare_expert_params."""
    w1, b1, w2, b2 = params
    N, d0 = x.shape
    d0_w, d1 = w1.shape
    d1_w, d2 = w2.shape
    assert d0_w == d0 and d1_w == d1, "weight shapes inconsistent with x"

    # Batch tile: aim for >=4 grid steps when N allows (v7x: >=2 per core for
    # DMA/compute overlap), capped at tile_n rows, sublane-aligned to 8.
    tile = min(_round_up(tile_n, 8), max(8, _round_up(pl.cdiv(N, 4), 8)))
    grid = (pl.cdiv(N, tile),)

    xi = jnp.dtype(x.dtype).itemsize
    wi = jnp.dtype(w1.dtype).itemsize
    oi = jnp.dtype(x.dtype).itemsize

    # Explicit VMEM budget: double-buffered x/out tiles, (default double-
    # buffered) resident weights+biases, plus in-kernel f32/bf16 intermediates.
    buf_bytes = (
        2 * tile * d0 * xi
        + 2 * ((d0 * d1 + d1 * d2) * wi + (d1 + d2) * 4)
        + 2 * tile * d2 * oi
        + tile * d1 * (4 + wi) + tile * d2 * 4
    )
    vmem_limit = min(max(int(buf_bytes * 1.5), 32 << 20), 64 << 20)

    cost = pl.CostEstimate(
        flops=2 * N * d1 * (d0 + d2),
        transcendentals=0,
        bytes_accessed=(N * d0 * xi
                        + (d0 * d1 + d1 * d2) * wi
                        + (d1 + d2) * 4
                        + N * d2 * oi),
    )

    return pl.pallas_call(
        expert_kernel,
        out_shape=jax.ShapeDtypeStruct((N, d2), x.dtype),
        grid_spec=pltpu.PrefetchScalarGridSpec(
            num_scalar_prefetch=0,
            grid=grid,
            in_specs=[
                pl.BlockSpec((tile, d0), lambda i: (i, 0)),  # x: streamed, unpadded
                pl.BlockSpec((d0, d1), lambda i: (0, 0)),    # W1: resident (full extent)
                pl.BlockSpec((1, d1), lambda i: (0, 0)),     # b1
                pl.BlockSpec((d1, d2), lambda i: (0, 0)),    # W2: resident (full extent)
                pl.BlockSpec((1, d2), lambda i: (0, 0)),     # b2
            ],
            out_specs=pl.BlockSpec((tile, d2), lambda i: (i, 0)),  # unpadded d2
        ),
        compiler_params=pltpu.CompilerParams(
            dimension_semantics=("parallel",),  # megacore-shardable batch axis
            vmem_limit_bytes=vmem_limit,
        ),
        cost_estimate=cost,
    )(x, w1, b1, w2, b2)


if __name__ == "__main__":
    # dims = [d0, d1, d2] as in Expert(dims)
    dims = (32, 64, 16)
    N = 32  # small demo batch; wrapper handles arbitrary N (ragged last tile)

    key = jax.random.PRNGKey(0)
    kx, k1, k2, k3, k4 = jax.random.split(key, 5)

    x = jax.random.normal(kx, (N, dims[0]), dtype=jnp.float32)

    # Deterministic parameter init (uniform, torch-Linear-like fan-in scaling).
    bound1 = 1.0 / (dims[0] ** 0.5)
    w1 = jax.random.uniform(k1, (dims[0], dims[1]), jnp.float32, -bound1, bound1)
    b1 = jax.random.uniform(k2, (dims[1],), jnp.float32, -bound1, bound1)
    bound2 = 1.0 / (dims[1] ** 0.5)
    w2 = jax.random.uniform(k3, (dims[1], dims[2]), jnp.float32, -bound2, bound2)
    b2 = jax.random.uniform(k4, (dims[2],), jnp.float32, -bound2, bound2)

    # One-time weight prep (bf16 cast) outside the jitted per-call path.
    params = prepare_expert_params(w1, b1, w2, b2, compute_dtype=jnp.bfloat16)

    fwd = jax.jit(functools.partial(expert_forward, tile_n=512))
    out = jax.block_until_ready(fwd(x, params))

    # Pure-JAX f32 reference (kernel uses bf16 operands -> loose tolerance).
    ref = jnp.maximum(x @ w1 + b1, 0.0) @ w2 + b2
    assert out.shape == (N, dims[2])
    assert jnp.allclose(out, ref, atol=3e-2, rtol=3e-2), "mismatch vs reference"

    print("KERNEL_OK")
</pallas_src>

<mosaic_0001>
module attributes {stable_mosaic.version = 11 : i64} {
  func.func @expert_kernel(%arg0: i32, %arg1: memref<8x32xf32, #tpu.memory_space<vmem>>, %arg2: memref<32x64xbf16, #tpu.memory_space<vmem>>, %arg3: memref<1x64xf32, #tpu.memory_space<vmem>>, %arg4: memref<64x16xbf16, #tpu.memory_space<vmem>>, %arg5: memref<1x16xf32, #tpu.memory_space<vmem>>, %arg6: memref<8x16xf32, #tpu.memory_space<vmem>>) attributes {dimension_semantics = [#tpu.dimension_semantics<parallel>], iteration_bounds = array<i64: 4>, scalar_prefetch = 0 : i64, scratch_operands = 0 : i64, tpu.core_type = #tpu.core_type<tc>, window_params = [{transform_indices = @transform_0, window_bounds = array<i64: 8, 32>}, {pipeline_mode = #tpu.pipeline_mode<synchronous>, transform_indices = @transform_1, window_bounds = array<i64: 32, 64>}, {pipeline_mode = #tpu.pipeline_mode<synchronous>, transform_indices = @transform_2, window_bounds = array<i64: 1, 64>}, {pipeline_mode = #tpu.pipeline_mode<synchronous>, transform_indices = @transform_3, window_bounds = array<i64: 64, 16>}, {pipeline_mode = #tpu.pipeline_mode<synchronous>, transform_indices = @transform_4, window_bounds = array<i64: 1, 16>}, {transform_indices = @transform_5, window_bounds = array<i64: 8, 16>}]} {
    %c0 = arith.constant 0 : index
    %c0_0 = arith.constant 0 : index
    %0 = vector.load %arg1[%c0, %c0_0] : memref<8x32xf32, #tpu.memory_space<vmem>>, vector<8x32xf32>
    %1 = arith.truncf %0 : vector<8x32xf32> to vector<8x32xbf16>
    %c0_1 = arith.constant 0 : index
    %c0_2 = arith.constant 0 : index
    %2 = vector.load %arg2[%c0_1, %c0_2] : memref<32x64xbf16, #tpu.memory_space<vmem>>, vector<32x64xbf16>
    %cst = arith.constant dense<0.000000e+00> : vector<8x64xf32>
    %3 = tpu.matmul %1, %2, %cst {dimension_numbers = #tpu.dot_dimension_numbers<[1], [0], [0], [1], [0, 0, 1, 1], [], []>} : vector<8x32xbf16>, vector<32x64xbf16>, vector<8x64xf32> -> vector<8x64xf32>
    %c0_3 = arith.constant 0 : index
    %c0_4 = arith.constant 0 : index
    %4 = vector.load %arg3[%c0_3, %c0_4] : memref<1x64xf32, #tpu.memory_space<vmem>>, vector<1x64xf32>
    %5 = vector.broadcast %4 : vector<1x64xf32> to vector<8x64xf32>
    %6 = arith.addf %3, %5 : vector<8x64xf32>
    %cst_5 = arith.constant 0.000000e+00 : f32
    %7 = vector.broadcast %cst_5 : f32 to vector<8x64xf32>
    %8 = arith.maximumf %6, %7 : vector<8x64xf32>
    %9 = arith.truncf %8 : vector<8x64xf32> to vector<8x64xbf16>
    %c0_6 = arith.constant 0 : index
    %c0_7 = arith.constant 0 : index
    %10 = vector.load %arg4[%c0_6, %c0_7] : memref<64x16xbf16, #tpu.memory_space<vmem>>, vector<64x16xbf16>
    %cst_8 = arith.constant dense<0.000000e+00> : vector<8x16xf32>
    %11 = tpu.matmul %9, %10, %cst_8 {dimension_numbers = #tpu.dot_dimension_numbers<[1], [0], [0], [1], [0, 0, 1, 1], [], []>} : vector<8x64xbf16>, vector<64x16xbf16>, vector<8x16xf32> -> vector<8x16xf32>
    %c0_9 = arith.constant 0 : index
    %c0_10 = arith.constant 0 : index
    %12 = vector.load %arg5[%c0_9, %c0_10] : memref<1x16xf32, #tpu.memory_space<vmem>>, vector<1x16xf32>
    %13 = vector.broadcast %12 : vector<1x16xf32> to vector<8x16xf32>
    %14 = arith.addf %11, %13 : vector<8x16xf32>
    %c0_11 = arith.constant 0 : index
    %c0_12 = arith.constant 0 : index
    %15 = vector.load %arg6[%c0_11, %c0_12] : memref<8x16xf32, #tpu.memory_space<vmem>>, vector<8x16xf32>
    tpu.vector_store %arg6[%c0_11, %c0_12], %14 {strides = array<i32>} : memref<8x16xf32, #tpu.memory_space<vmem>>, vector<8x16xf32>,
    return
  }
  func.func @transform_0(%arg0: i32) -> (i32, i32) {
    %c0_i32 = arith.constant 0 : i32
    %c0_i32_0 = arith.constant 0 : i32
    return %arg0, %c0_i32 : i32, i32
  }
  func.func @transform_1(%arg0: i32) -> (i32, i32) {
    %c0_i32 = arith.constant 0 : i32
    %c0_i32_0 = arith.constant 0 : i32
    %c0_i32_1 = arith.constant 0 : i32
    return %c0_i32, %c0_i32_0 : i32, i32
  }
  func.func @transform_2(%arg0: i32) -> (i32, i32) {
    %c0_i32 = arith.constant 0 : i32
    %c0_i32_0 = arith.constant 0 : i32
    %c0_i32_1 = arith.constant 0 : i32
    return %c0_i32, %c0_i32_0 : i32, i32
  }
  func.func @transform_3(%arg0: i32) -> (i32, i32) {
    %c0_i32 = arith.constant 0 : i32
    %c0_i32_0 = arith.constant 0 : i32
    %c0_i32_1 = arith.constant 0 : i32
    return %c0_i32, %c0_i32_0 : i32, i32
  }
  func.func @transform_4(%arg0: i32) -> (i32, i32) {
    %c0_i32 = arith.constant 0 : i32
    %c0_i32_0 = arith.constant 0 : i32
    %c0_i32_1 = arith.constant 0 : i32
    return %c0_i32, %c0_i32_0 : i32, i32
  }
  func.func @transform_5(%arg0: i32) -> (i32, i32) {
    %c0_i32 = arith.constant 0 : i32
    %c0_i32_0 = arith.constant 0 : i32
    return %arg0, %c0_i32 : i32, i32
  }
}

</mosaic_0001>

<bundles_post_ra>
// kernel: expert_forward.1
= control target key start
LH: loop header
LB: loop body
LE: loop exit
PB: predicated region body
PF: predicated region fallthrough
CT: control target
= control target key end

     0   :  { %10 = vsyncpa [#allocation3], 0  ;;  %s608_s18 = smov 0   ;;  %s672_s0 = inlined_call_operand.vmem [shape: f32[32,32], index: 0, kind: input, shape index: {}]   ;;  %s673_s1 = inlined_call_operand.hbm [shape: bf16[32,64], index: 1, kind: input, shape index: {}]   ;;  %s674_s2 = inlined_call_operand.vmem [shape: f32[1,64], index: 2, kind: input, shape index: {}]   ;;  %s675_s3 = inlined_call_operand.vmem [shape: bf16[64,16], index: 3, kind: input, shape index: {}]   ;;  %s676_s4 = inlined_call_operand.vmem [shape: f32[1,16], index: 4, kind: input, shape index: {}]   ;;  %s677_s5 = inlined_call_operand.vmem [shape: f32[32,16], index: 5, kind: output, shape index: {}]  }
   0x1 LB: > { %s614_s19 = sadd.s32 4294967295, %s571_s18   ;;  %p459_p0 = scmp.ge.s32.totalorder %s571_s18, 1  ;;  %s571_s18 = sphi %s608_s18, %s16_s18  }
   0x2   : > { %p157_p1 = scmp.lt.s32.totalorder %s571_s18, 5  ;;  %s573_s20 = smov [#allocation2]  }
   0x3   : > { %s169_s21 = sshll.u32 %s573_s20, 4  ;;  %p514_p3 = scmp.eq.s32.totalorder %s614_s19, 0  ;;  %s170_s21 = int_to_ptr.vmem [resolvable:$true] %s169_s21 }
   0x4   : > { %p618_p2 = pnand %p459_p0, %p157_p1  ;;  %s546_s23 = scalar_lea.vmem %s170_s21, 256 }
   0x5   : > { %p547_p7 = scmp.ne.s32.totalorder %s170_s21, %s546_s23  ;;  %p554_p10 = scmp.lt.s32.totalorder %s170_s21, %s170_s21 }
   0x6   : > { %p510_p4 = pneg %p618_p2  ;;  %p555_p11 = scmp.lt.s32.totalorder %s546_s23, %s546_s23 }
   0x8   : > { %p511_p5 = pnand %p514_p3, %p510_p4  ;;  %p556_p12 = por %p555_p11, %p554_p10 }
   0xa   : > { %p537_p6 = pneg %p511_p5 }
   0xc   : > { %p549_p8 = pnand %p547_p7, %p537_p6 }
   0xe   : > { %p550_p9 = pneg %p549_p8 }
  0x10   : > { %p557_p13 = pnand %p556_p12, %p550_p9 }
  0x12   : > { %560 = shalt.err (!%p557_p13)
}
  0x13   : > { %s574_s24 = smov 64   ;;  %s575_s25 = smov 4  }
  0x14   : > { %513 = dma.hbm_to_vmem [thread:$0]  (!%p511_p5), %s673_s1, 256, %s170_s21, [#allocation3], %s574_s24, %s574_s24, %s575_s25  }
  0x15   : > { %201 = sbr.rel (%p618_p2) target bundleno = 435 (0x1b3), region = 40 }
  0x1a   : > { %566 = dma.done.wait (%p514_p3), [#allocation3], 256  }
  0x1b   : > { %568 = vsyncadd (%p514_p3), [#allocation3], 4294967040  ;;  %p227_p0 = scmp.lt.s32.totalorder %s614_s19, 3  ;;  %v576_v0 = vmov 0.0   ;;  %vm577_vm0 = vmmov 0   ;;  %v529_v1 = vld [vmem:[#allocation2 + $0x8] sm:$0xff]  }
  0x1c   : > { %486 = vmatprep.subr.bf16.mxu0 %v576_v0  ;;  %490 = vmatprep.mubr.msk.bf16.mxu0 %vm577_vm0, %v576_v0  ;;  %v530_v2 = vld [vmem:[#allocation2] sm:$0xff]   ;;  %v531_v4 = vld [vmem:[%s675_s3 + $0x18] sm:$0xff]   ;;  %v532_v5 = vld [vmem:[%s675_s3 + $0x10] sm:$0xff]   ;;  %vm261_vm1 = vcmask 261120   ;;  %vm346_vm2 = vcmask 523264   ;;  %vm390_vm3 = vcmask 130048  }
  0x1d   : > { %s680_s19 = smov (!%p227_p0, %s614_s19), 3  ;;  %494 = vmatprep.subr.bf16.mxu1 %v576_v0  ;;  %502 = vmatprep.mubr.msk.bf16.mxu1 %vm577_vm0, %v576_v0  ;;  %v533_v7 = vld [vmem:[%s675_s3 + $0x8] sm:$0xff]   ;;  %v534_v8 = vld [vmem:[%s675_s3] sm:$0xff]  }
  0x1e   : > { %s464_s28 = sshll.u32 %s680_s19, 3  ;;  %487 = vmatpush3.bf16.msra.mxu0 %v529_v1  ;;  %495 = vmatpush3.bf16.msra.mxu1 %v531_v4  ;;  %v466_v9 = vld [vmem:[%s674_s2] ss:$0 sm:$0xff] }
  0x1f   : > { %s230_s6 = scalar_lea.vmem %s672_s0, %s464_s28  ;;  %488 = vmatprep.subr.bf16.mxu0 %v576_v0  ;;  %496 = vmatprep.subr.bf16.mxu1 %v576_v0  ;;  %v470_v17 = vld [vmem:[%s676_s4] ss:$0 sm:$0xff]  ;;  %s234_s23 = scalar_lea.vmem %s677_s5, %s464_s28 }
  0x20   : > { %v236_v3 = vld [vmem:[%s230_s6] sm:$0xff] }
  0x21   : > { %v237_v6 = vpack.c.bf16 %v236_v3, %v236_v3 }
  0x22   : > { %489 = vmatpush3.bf16.msra.mxu0 %v530_v2  ;;  %497 = vmatpush3.bf16.msra.mxu1 %v532_v5 }
  0x23   : > { %498 = vmatprep.subr.bf16.mxu1 %v576_v0 }
  0x25   : > { %491 = vmatmul.mubr.msk.bf16.vlgmr.msra.gmra.mxu0 %vm261_vm1, %v237_v6 }
  0x26   : > { %499 = vmatpush3.bf16.msra.mxu1 %v533_v7 }
  0x27   : > { %500 = vmatprep.subr.bf16.mxu1 %v576_v0 }
  0x2a   : > { %501 = vmatpush3.bf16.msra.mxu1 %v534_v8 }
  0xe5   : > { %v299_v10 = vpop.f32.mrf.mxu0 }
  0xe6   : > { %v300_v11 = vadd.f32 %v466_v9, %v299_v10 }
  0xe7   : > { %v492_v12 = vpop.f32.mrf.mxu0 }
  0xe8   : > { %v305_v13 = vmax.f32 %v300_v11, 0.0 }
  0xe9   : > { %v302_v14 = vpop.f32.mrf.mxu0 }
  0xea   : > { %v306_v15 = vpack.c.bf16 %v305_v13, %v305_v13 }
  0xeb   : > { %v493_v16 = vpop.f32.mrf.mxu0 }
  0xec   : > { %503 = vmatmul.mubr.msk.bf16.vlgmr.msra.gmra.mxu1 %vm346_vm2, %v306_v15 }
 0x1ac   : > { %v384_v18 = vpop.f32.mrf.mxu1 }
 0x1ad   : > { %v385_v19 = vadd.f32 %v470_v17, %v384_v18 }
 0x1ae   : > { %v504_v20 = vpop.f32.mrf.mxu1 }
 0x1af   : > { %391 = vst.msk [vmem:[%s234_s23] sm:$0xff] %vm390_vm3, %v385_v19 }
 0x1b0   : > { %v387_v21 = vpop.f32.mrf.mxu1 }
 0x1b2   : > { %v505_v22 = vpop.f32.mrf.mxu1 }
 0x1b3 PF: > { %s16_s18 = sadd.s32 1, %s571_s18  }
 0x1b4   : > { %p13_p1 = scmp.ge.s32.totalorder %s16_s18, 6  }
 0x1b6   :  { %15 = sbr.rel (!%p13_p1) target bundleno = 1 (0x1), region = 75 }
 0x1bb   :  { %411 = vsyncpa [#allocation3], 1 }
 0x1bc   :  { %413 = vsyncpa [#allocation3 + $0x1], 1 }

</bundles_post_ra>
